<compile_context>
chip_gen: v7x
topology: tpu7x:2x2x1
jax: 0.10.0
libtpu: 0.0.40
codegen_flags: <defaults>
</compile_context>

<pallas_src>
import functools

import jax
import jax.numpy as jnp
from jax.experimental import pallas as pl
from jax.experimental.pallas import tpu as pltpu


# ------------------------------ Fused kernel --------------------------------


def _make_textcnn_kernel(kernel_sizes, kernel_num, fused_embed, mm_dtype):
    """Builds the fused (tokens|embeddings) -> logits kernel for fixed kernel_sizes."""
    K = kernel_num
    total_cols = sum(kernel_sizes) * K

    def kernel(*refs):
        if fused_embed:
            tok_ref, emb_ref, wcat_ref, bcat_ref, wf_ref, bf_ref, o_ref = refs
            TB, L = tok_ref.shape
            V, _E = emb_ref.shape
            # Embedding gather as an exact one-hot matmul (selects rows of the table).
            tok = tok_ref[...]                                           # (TB, L) i32
            lane_ids = jax.lax.broadcasted_iota(jnp.int32, (TB, L, V), 2)
            onehot = (tok[:, :, None] == lane_ids).astype(mm_dtype)      # (TB, L, V)
            x_mm = jnp.dot(onehot.reshape(TB * L, V), emb_ref[...],
                           preferred_element_type=jnp.float32).astype(mm_dtype)
        else:
            x_ref, wcat_ref, bcat_ref, wf_ref, bf_ref, o_ref = refs
            TB, L, E = x_ref.shape
            x_mm = x_ref[...].reshape(TB * L, E)                         # already mm_dtype

        # ONE wide matmul: every branch, every tap.  (TB*L, E) @ (E, sum(ks)*K).
        z = jnp.dot(x_mm, wcat_ref[...], preferred_element_type=jnp.float32)
        z = z.reshape(TB, L, total_cols)                                 # f32

        b_all = bcat_ref[...]                                            # (1, n*K)  f32
        wf = wf_ref[...]                                                 # (n*K, Cp) mm_dtype
        bf = bf_ref[...]                                                 # (1, Cp)   f32

        logits = None
        base = 0   # column offset into z / wcat   (branch-major, tap-minor)
        col = 0    # row offset into fc weights / conv bias (branch-major)
        for ks in kernel_sizes:
            Lout = L - ks + 1
            # Sum the ks time-shifted tap blocks (small, E-independent tensor).
            acc = z[:, 0:Lout, base:base + K]
            for dt in range(1, ks):
                acc = acc + z[:, dt:dt + Lout, base + dt * K:base + (dt + 1) * K]
            # bias + ReLU + global max over time, all f32.
            y = jnp.maximum(acc + b_all[:, col:col + K][:, None, :], 0.0)
            pooled = jnp.max(y, axis=1)                                  # (TB, K)
            # Fold the classifier in per branch (avoids lane-concat of pooled feats).
            contrib = jnp.dot(pooled.astype(mm_dtype), wf[col:col + K, :],
                              preferred_element_type=jnp.float32)
            logits = contrib if logits is None else logits + contrib
            base += ks * K
            col += K

        # TODO(synk): nn.Dropout treated as identity (inference/eval semantics).
        o_ref[...] = logits + bf

    return kernel


# -------------------------------- Wrapper ------------------------------------


def textcnn_forward(params, tokens, *, kernel_sizes, batch_tile=None,
                    use_bf16=True, fuse_embedding=None):
    """tokens: (B, L) int32 -> logits (B, class_num) f32."""
    kernel_sizes = tuple(kernel_sizes)
    emb = params["emb"]
    V, E = emb.shape
    B, L = tokens.shape
    K = params[f"conv{kernel_sizes[0]}_b"].shape[-1]
    C = params["fc_b"].shape[-1]

    mm_dtype = jnp.bfloat16 if use_bf16 else jnp.float32

    if fuse_embedding is None:
        # One-hot-matmul gather only makes sense for small vocabularies.
        fuse_embedding = V <= 1024
    if batch_tile is None:
        # Large tiles amortize the ~0.35us per-grid-step overhead; multiple of 8.
        batch_tile = B if B <= 256 else 256
    assert B % batch_tile == 0, "batch must be divisible by batch_tile"
    grid = (B // batch_tile,)

    # Concatenate every branch's per-tap weights along the output axis:
    #   wcat[e, base_b + dt*K + k] == torch_W_b[k, 0, dt, e].
    wcat_parts, bcat_parts = [], []
    for ks in kernel_sizes:
        w = params[f"conv{ks}_w"]                     # (ks*E, K): w[dt*E+e, k]
        wcat_parts.append(w.reshape(ks, E, K).transpose(1, 0, 2).reshape(E, ks * K))
        bcat_parts.append(params[f"conv{ks}_b"])      # (1, K)
    wcat = jnp.concatenate(wcat_parts, axis=1).astype(mm_dtype)   # (E, sum(ks)*K)
    bcat = jnp.concatenate(bcat_parts, axis=1)                    # (1, n*K) f32

    # Lane-dense classifier: zero-pad class_num up to a multiple of 128 columns.
    C_pad = max(128, ((C + 127) // 128) * 128)
    wf = jnp.pad(params["fc_w"], ((0, 0), (0, C_pad - C))).astype(mm_dtype)
    bf = jnp.pad(params["fc_b"], ((0, 0), (0, C_pad - C)))        # f32

    const2 = lambda i: (0, 0)
    if fuse_embedding:
        operands = [tokens.astype(jnp.int32), emb.astype(mm_dtype), wcat, bcat, wf, bf]
        in_specs = [pl.BlockSpec((batch_tile, L), lambda i: (i, 0)),
                    pl.BlockSpec(emb.shape, const2)]
    else:
        # Gather + bf16 cast in the wrapper: halves HBM->VMEM bytes for the x tile.
        x = jnp.take(emb, tokens, axis=0).astype(mm_dtype)        # (B, L, E)
        operands = [x, wcat, bcat, wf, bf]
        in_specs = [pl.BlockSpec((batch_tile, L, E), lambda i: (i, 0, 0))]
    # Weights/biases: constant index_map -> stay VMEM-resident across batch tiles.
    in_specs += [pl.BlockSpec(wcat.shape, const2),
                 pl.BlockSpec(bcat.shape, const2),
                 pl.BlockSpec(wf.shape, const2),
                 pl.BlockSpec(bf.shape, const2)]

    kernel = _make_textcnn_kernel(kernel_sizes, K, fuse_embedding, mm_dtype)

    out = pl.pallas_call(
        kernel,
        out_shape=jax.ShapeDtypeStruct((B, C_pad), jnp.float32),
        grid=grid,
        in_specs=in_specs,
        out_specs=pl.BlockSpec((batch_tile, C_pad), lambda i: (i, 0)),
        compiler_params=pltpu.CompilerParams(
            dimension_semantics=("parallel",),        # batch tiles are independent
            vmem_limit_bytes=64 * 1024 * 1024,        # within physical on v5e/v6e/v7x
        ),
    )(*operands)
    return out[:, :C]


# --------------------------- Parameters (PyTorch-like init) ------------------


def init_params(key, *, embed_num, embed_dim, class_num, kernel_num, kernel_sizes):
    n = len(kernel_sizes)
    keys = jax.random.split(key, 2 * n + 3)
    params = {"emb": jax.random.normal(keys[0], (embed_num, embed_dim), jnp.float32)}
    for i, ks in enumerate(kernel_sizes):
        bound = (1 * ks * embed_dim) ** -0.5
        # Stored pre-transposed as (ks*E, K): w[dt*E + e, k] == torch_W[k, 0, dt, e].
        params[f"conv{ks}_w"] = jax.random.uniform(
            keys[1 + 2 * i], (ks * embed_dim, kernel_num), jnp.float32, -bound, bound)
        params[f"conv{ks}_b"] = jax.random.uniform(
            keys[2 + 2 * i], (1, kernel_num), jnp.float32, -bound, bound)
    bound = (n * kernel_num) ** -0.5
    params["fc_w"] = jax.random.uniform(
        keys[2 * n + 1], (n * kernel_num, class_num), jnp.float32, -bound, bound)
    params["fc_b"] = jax.random.uniform(
        keys[2 * n + 2], (1, class_num), jnp.float32, -bound, bound)
    return params


# ------------------------- Pure-JAX reference (f32) ---------------------------


def reference_forward(params, tokens, kernel_sizes):
    """Matches the PyTorch forward (dropout = identity) in f32."""
    x = jnp.take(params["emb"], tokens, axis=0)                   # (B, L, E)
    _B, L, E = x.shape
    feats = []
    for ks in kernel_sizes:
        w = params[f"conv{ks}_w"]                                 # (ks*E, K)
        b = params[f"conv{ks}_b"]                                 # (1, K)
        Lout = L - ks + 1
        acc = 0.0
        for dt in range(ks):
            acc = acc + jnp.einsum("ble,ek->blk", x[:, dt:dt + Lout, :],
                                   w[dt * E:(dt + 1) * E, :])
        feats.append(jnp.max(jax.nn.relu(acc + b[:, None, :]), axis=1))
    pooled = jnp.concatenate(feats, axis=1)
    return pooled @ params["fc_w"] + params["fc_b"]


# ----------------------------------- Main ------------------------------------

if __name__ == "__main__":
    EMBED_NUM, EMBED_DIM = 64, 32          # args.embed_num, args.embed_dim
    CLASS_NUM = 2                          # args.class_num
    KERNEL_NUM = 16                        # args.kernel_num
    KERNEL_SIZES = (3, 4, 5)               # args.kernel_sizes
    BATCH, SEQ_LEN = 2, 16

    key = jax.random.PRNGKey(0)
    k_params, k_tok = jax.random.split(key)

    params = init_params(k_params, embed_num=EMBED_NUM, embed_dim=EMBED_DIM,
                         class_num=CLASS_NUM, kernel_num=KERNEL_NUM,
                         kernel_sizes=KERNEL_SIZES)
    tokens = jax.random.randint(k_tok, (BATCH, SEQ_LEN), 0, EMBED_NUM, dtype=jnp.int32)

    # Primary path: fused in-kernel embedding gather (small vocab).
    fwd = jax.jit(functools.partial(textcnn_forward, kernel_sizes=KERNEL_SIZES))
    logits = jax.block_until_ready(fwd(params, tokens))

    # Fallback path: wrapper-side gather (large-vocab configuration).
    fwd_nofuse = jax.jit(functools.partial(textcnn_forward, kernel_sizes=KERNEL_SIZES,
                                           fuse_embedding=False))
    logits_nofuse = jax.block_until_ready(fwd_nofuse(params, tokens))

    ref = reference_forward(params, tokens, KERNEL_SIZES)

    assert logits.shape == (BATCH, CLASS_NUM), logits.shape
    assert bool(jnp.all(jnp.isfinite(logits))), "non-finite logits"
    # bf16 MXU operands with f32 accumulation -> small rounding vs the f32 reference.
    assert bool(jnp.allclose(logits, ref, rtol=5e-2, atol=5e-2)), (logits, ref)
    assert bool(jnp.allclose(logits_nofuse, ref, rtol=5e-2, atol=5e-2)), (logits_nofuse, ref)
    print("KERNEL_OK")
</pallas_src>

<mosaic_0001>
module attributes {stable_mosaic.version = 11 : i64} {
  func.func @kernel(%arg0: i32, %arg1: memref<2x16xi32, #tpu.memory_space<vmem>>, %arg2: memref<64x32xbf16, #tpu.memory_space<vmem>>, %arg3: memref<32x192xbf16, #tpu.memory_space<vmem>>, %arg4: memref<1x48xf32, #tpu.memory_space<vmem>>, %arg5: memref<48x128xbf16, #tpu.memory_space<vmem>>, %arg6: memref<1x128xf32, #tpu.memory_space<vmem>>, %arg7: memref<2x128xf32, #tpu.memory_space<vmem>>) attributes {dimension_semantics = [#tpu.dimension_semantics<parallel>], iteration_bounds = array<i64: 1>, scalar_prefetch = 0 : i64, scratch_operands = 0 : i64, tpu.core_type = #tpu.core_type<tc>, window_params = [{transform_indices = @transform_0, window_bounds = array<i64: 2, 16>}, {pipeline_mode = #tpu.pipeline_mode<synchronous>, transform_indices = @transform_1, window_bounds = array<i64: 64, 32>}, {pipeline_mode = #tpu.pipeline_mode<synchronous>, transform_indices = @transform_2, window_bounds = array<i64: 32, 192>}, {pipeline_mode = #tpu.pipeline_mode<synchronous>, transform_indices = @transform_3, window_bounds = array<i64: 1, 48>}, {pipeline_mode = #tpu.pipeline_mode<synchronous>, transform_indices = @transform_4, window_bounds = array<i64: 48, 128>}, {pipeline_mode = #tpu.pipeline_mode<synchronous>, transform_indices = @transform_5, window_bounds = array<i64: 1, 128>}, {transform_indices = @transform_6, window_bounds = array<i64: 2, 128>}]} {
    %c0 = arith.constant 0 : index
    %c0_0 = arith.constant 0 : index
    %0 = vector.load %arg1[%c0, %c0_0] : memref<2x16xi32, #tpu.memory_space<vmem>>, vector<2x16xi32>
    %1 = tpu.iota {dimensions = array<i32: 2>} : vector<2x16x64xi32>
    %2 = vector.shape_cast %0 : vector<2x16xi32> to vector<2x16x1xi32>
    %3 = vector.broadcast %2 : vector<2x16x1xi32> to vector<2x16x64xi32>
    %4 = arith.cmpi eq, %3, %1 : vector<2x16x64xi32>
    %5 = arith.extui %4 : vector<2x16x64xi1> to vector<2x16x64xi32>
    %6 = arith.sitofp %5 : vector<2x16x64xi32> to vector<2x16x64xf32>
    %7 = arith.truncf %6 : vector<2x16x64xf32> to vector<2x16x64xbf16>
    %8 = vector.shape_cast %7 : vector<2x16x64xbf16> to vector<32x64xbf16>
    %c0_1 = arith.constant 0 : index
    %c0_2 = arith.constant 0 : index
    %9 = vector.load %arg2[%c0_1, %c0_2] : memref<64x32xbf16, #tpu.memory_space<vmem>>, vector<64x32xbf16>
    %cst = arith.constant dense<0.000000e+00> : vector<32x32xf32>
    %10 = tpu.matmul %8, %9, %cst {dimension_numbers = #tpu.dot_dimension_numbers<[1], [0], [0], [1], [0, 0, 1, 1], [], []>} : vector<32x64xbf16>, vector<64x32xbf16>, vector<32x32xf32> -> vector<32x32xf32>
    %11 = arith.truncf %10 : vector<32x32xf32> to vector<32x32xbf16>
    %c0_3 = arith.constant 0 : index
    %c0_4 = arith.constant 0 : index
    %12 = vector.load %arg3[%c0_3, %c0_4] : memref<32x192xbf16, #tpu.memory_space<vmem>>, vector<32x192xbf16>
    %cst_5 = arith.constant dense<0.000000e+00> : vector<32x192xf32>
    %13 = tpu.matmul %11, %12, %cst_5 {dimension_numbers = #tpu.dot_dimension_numbers<[1], [0], [0], [1], [0, 0, 1, 1], [], []>} : vector<32x32xbf16>, vector<32x192xbf16>, vector<32x192xf32> -> vector<32x192xf32>
    %14 = vector.shape_cast %13 : vector<32x192xf32> to vector<2x16x192xf32>
    %c0_6 = arith.constant 0 : index
    %c0_7 = arith.constant 0 : index
    %15 = vector.load %arg4[%c0_6, %c0_7] : memref<1x48xf32, #tpu.memory_space<vmem>>, vector<1x48xf32>
    %c0_8 = arith.constant 0 : index
    %c0_9 = arith.constant 0 : index
    %16 = vector.load %arg5[%c0_8, %c0_9] : memref<48x128xbf16, #tpu.memory_space<vmem>>, vector<48x128xbf16>
    %c0_10 = arith.constant 0 : index
    %c0_11 = arith.constant 0 : index
    %17 = vector.load %arg6[%c0_10, %c0_11] : memref<1x128xf32, #tpu.memory_space<vmem>>, vector<1x128xf32>
    %18 = vector.extract_strided_slice %14 {offsets = [0, 0, 0], sizes = [2, 14, 16], strides = [1, 1, 1]} : vector<2x16x192xf32> to vector<2x14x16xf32>
    %19 = vector.extract_strided_slice %14 {offsets = [0, 1, 16], sizes = [2, 14, 16], strides = [1, 1, 1]} : vector<2x16x192xf32> to vector<2x14x16xf32>
    %20 = arith.addf %18, %19 : vector<2x14x16xf32>
    %21 = vector.extract_strided_slice %14 {offsets = [0, 2, 32], sizes = [2, 14, 16], strides = [1, 1, 1]} : vector<2x16x192xf32> to vector<2x14x16xf32>
    %22 = arith.addf %20, %21 : vector<2x14x16xf32>
    %23 = vector.extract_strided_slice %15 {offsets = [0, 0], sizes = [1, 16], strides = [1, 1]} : vector<1x48xf32> to vector<1x16xf32>
    %24 = vector.shape_cast %23 : vector<1x16xf32> to vector<1x1x16xf32>
    %25 = vector.broadcast %24 : vector<1x1x16xf32> to vector<2x14x16xf32>
    %26 = arith.addf %22, %25 : vector<2x14x16xf32>
    %cst_12 = arith.constant 0.000000e+00 : f32
    %27 = vector.broadcast %cst_12 : f32 to vector<2x14x16xf32>
    %28 = arith.maximumf %26, %27 : vector<2x14x16xf32>
    %cst_13 = arith.constant dense<0xFF800000> : vector<2x16xf32>
    %29 = vector.multi_reduction <maximumf>, %28, %cst_13 [1] : vector<2x14x16xf32> to vector<2x16xf32>
    %30 = arith.truncf %29 : vector<2x16xf32> to vector<2x16xbf16>
    %31 = vector.extract_strided_slice %16 {offsets = [0, 0], sizes = [16, 128], strides = [1, 1]} : vector<48x128xbf16> to vector<16x128xbf16>
    %cst_14 = arith.constant dense<0.000000e+00> : vector<2x128xf32>
    %32 = tpu.matmul %30, %31, %cst_14 {dimension_numbers = #tpu.dot_dimension_numbers<[1], [0], [0], [1], [0, 0, 1, 1], [], []>} : vector<2x16xbf16>, vector<16x128xbf16>, vector<2x128xf32> -> vector<2x128xf32>
    %33 = vector.extract_strided_slice %14 {offsets = [0, 0, 48], sizes = [2, 13, 16], strides = [1, 1, 1]} : vector<2x16x192xf32> to vector<2x13x16xf32>
    %34 = vector.extract_strided_slice %14 {offsets = [0, 1, 64], sizes = [2, 13, 16], strides = [1, 1, 1]} : vector<2x16x192xf32> to vector<2x13x16xf32>
    %35 = arith.addf %33, %34 : vector<2x13x16xf32>
    %36 = vector.extract_strided_slice %14 {offsets = [0, 2, 80], sizes = [2, 13, 16], strides = [1, 1, 1]} : vector<2x16x192xf32> to vector<2x13x16xf32>
    %37 = arith.addf %35, %36 : vector<2x13x16xf32>
    %38 = vector.extract_strided_slice %14 {offsets = [0, 3, 96], sizes = [2, 13, 16], strides = [1, 1, 1]} : vector<2x16x192xf32> to vector<2x13x16xf32>
    %39 = arith.addf %37, %38 : vector<2x13x16xf32>
    %40 = vector.extract_strided_slice %15 {offsets = [0, 16], sizes = [1, 16], strides = [1, 1]} : vector<1x48xf32> to vector<1x16xf32>
    %41 = vector.shape_cast %40 : vector<1x16xf32> to vector<1x1x16xf32>
    %42 = vector.broadcast %41 : vector<1x1x16xf32> to vector<2x13x16xf32>
    %43 = arith.addf %39, %42 : vector<2x13x16xf32>
    %cst_15 = arith.constant 0.000000e+00 : f32
    %44 = vector.broadcast %cst_15 : f32 to vector<2x13x16xf32>
    %45 = arith.maximumf %43, %44 : vector<2x13x16xf32>
    %cst_16 = arith.constant dense<0xFF800000> : vector<2x16xf32>
    %46 = vector.multi_reduction <maximumf>, %45, %cst_16 [1] : vector<2x13x16xf32> to vector<2x16xf32>
    %47 = arith.truncf %46 : vector<2x16xf32> to vector<2x16xbf16>
    %48 = vector.extract_strided_slice %16 {offsets = [16, 0], sizes = [16, 128], strides = [1, 1]} : vector<48x128xbf16> to vector<16x128xbf16>
    %cst_17 = arith.constant dense<0.000000e+00> : vector<2x128xf32>
    %49 = tpu.matmul %47, %48, %cst_17 {dimension_numbers = #tpu.dot_dimension_numbers<[1], [0], [0], [1], [0, 0, 1, 1], [], []>} : vector<2x16xbf16>, vector<16x128xbf16>, vector<2x128xf32> -> vector<2x128xf32>
    %50 = arith.addf %32, %49 : vector<2x128xf32>
    %51 = vector.extract_strided_slice %14 {offsets = [0, 0, 112], sizes = [2, 12, 16], strides = [1, 1, 1]} : vector<2x16x192xf32> to vector<2x12x16xf32>
    %52 = vector.extract_strided_slice %14 {offsets = [0, 1, 128], sizes = [2, 12, 16], strides = [1, 1, 1]} : vector<2x16x192xf32> to vector<2x12x16xf32>
    %53 = arith.addf %51, %52 : vector<2x12x16xf32>
    %54 = vector.extract_strided_slice %14 {offsets = [0, 2, 144], sizes = [2, 12, 16], strides = [1, 1, 1]} : vector<2x16x192xf32> to vector<2x12x16xf32>
    %55 = arith.addf %53, %54 : vector<2x12x16xf32>
    %56 = vector.extract_strided_slice %14 {offsets = [0, 3, 160], sizes = [2, 12, 16], strides = [1, 1, 1]} : vector<2x16x192xf32> to vector<2x12x16xf32>
    %57 = arith.addf %55, %56 : vector<2x12x16xf32>
    %58 = vector.extract_strided_slice %14 {offsets = [0, 4, 176], sizes = [2, 12, 16], strides = [1, 1, 1]} : vector<2x16x192xf32> to vector<2x12x16xf32>
    %59 = arith.addf %57, %58 : vector<2x12x16xf32>
    %60 = vector.extract_strided_slice %15 {offsets = [0, 32], sizes = [1, 16], strides = [1, 1]} : vector<1x48xf32> to vector<1x16xf32>
    %61 = vector.shape_cast %60 : vector<1x16xf32> to vector<1x1x16xf32>
    %62 = vector.broadcast %61 : vector<1x1x16xf32> to vector<2x12x16xf32>
    %63 = arith.addf %59, %62 : vector<2x12x16xf32>
    %cst_18 = arith.constant 0.000000e+00 : f32
    %64 = vector.broadcast %cst_18 : f32 to vector<2x12x16xf32>
    %65 = arith.maximumf %63, %64 : vector<2x12x16xf32>
    %cst_19 = arith.constant dense<0xFF800000> : vector<2x16xf32>
    %66 = vector.multi_reduction <maximumf>, %65, %cst_19 [1] : vector<2x12x16xf32> to vector<2x16xf32>
    %67 = arith.truncf %66 : vector<2x16xf32> to vector<2x16xbf16>
    %68 = vector.extract_strided_slice %16 {offsets = [32, 0], sizes = [16, 128], strides = [1, 1]} : vector<48x128xbf16> to vector<16x128xbf16>
    %cst_20 = arith.constant dense<0.000000e+00> : vector<2x128xf32>
    %69 = tpu.matmul %67, %68, %cst_20 {dimension_numbers = #tpu.dot_dimension_numbers<[1], [0], [0], [1], [0, 0, 1, 1], [], []>} : vector<2x16xbf16>, vector<16x128xbf16>, vector<2x128xf32> -> vector<2x128xf32>
    %70 = arith.addf %50, %69 : vector<2x128xf32>
    %71 = vector.broadcast %17 : vector<1x128xf32> to vector<2x128xf32>
    %72 = arith.addf %70, %71 : vector<2x128xf32>
    %c0_21 = arith.constant 0 : index
    %c0_22 = arith.constant 0 : index
    %73 = vector.load %arg7[%c0_21, %c0_22] : memref<2x128xf32, #tpu.memory_space<vmem>>, vector<2x128xf32>
    tpu.vector_store %arg7[%c0_21, %c0_22], %72 {strides = array<i32>} : memref<2x128xf32, #tpu.memory_space<vmem>>, vector<2x128xf32>,
    return
  }
  func.func @transform_0(%arg0: i32) -> (i32, i32) {
    %c0_i32 = arith.constant 0 : i32
    %c0_i32_0 = arith.constant 0 : i32
    return %arg0, %c0_i32 : i32, i32
  }
  func.func @transform_1(%arg0: i32) -> (i32, i32) {
    %c0_i32 = arith.constant 0 : i32
    %c0_i32_0 = arith.constant 0 : i32
    %c0_i32_1 = arith.constant 0 : i32
    return %c0_i32, %c0_i32_0 : i32, i32
  }
  func.func @transform_2(%arg0: i32) -> (i32, i32) {
    %c0_i32 = arith.constant 0 : i32
    %c0_i32_0 = arith.constant 0 : i32
    %c0_i32_1 = arith.constant 0 : i32
    return %c0_i32, %c0_i32_0 : i32, i32
  }
  func.func @transform_3(%arg0: i32) -> (i32, i32) {
    %c0_i32 = arith.constant 0 : i32
    %c0_i32_0 = arith.constant 0 : i32
    %c0_i32_1 = arith.constant 0 : i32
    return %c0_i32, %c0_i32_0 : i32, i32
  }
  func.func @transform_4(%arg0: i32) -> (i32, i32) {
    %c0_i32 = arith.constant 0 : i32
    %c0_i32_0 = arith.constant 0 : i32
    %c0_i32_1 = arith.constant 0 : i32
    return %c0_i32, %c0_i32_0 : i32, i32
  }
  func.func @transform_5(%arg0: i32) -> (i32, i32) {
    %c0_i32 = arith.constant 0 : i32
    %c0_i32_0 = arith.constant 0 : i32
    %c0_i32_1 = arith.constant 0 : i32
    return %c0_i32, %c0_i32_0 : i32, i32
  }
  func.func @transform_6(%arg0: i32) -> (i32, i32) {
    %c0_i32 = arith.constant 0 : i32
    %c0_i32_0 = arith.constant 0 : i32
    return %arg0, %c0_i32 : i32, i32
  }
}

</mosaic_0001>

<bundles_post_ra>
// kernel: textcnn_forward.1
= control target key start
LH: loop header
LB: loop body
LE: loop exit
PB: predicated region body
PF: predicated region fallthrough
CT: control target
= control target key end

     0   :  { %11 = vsyncpa [#allocation3], 0  ;;  %s1320_s0 = inlined_call_operand.hbm [shape: s32[2,16], index: 0, kind: input, shape index: {}]   ;;  %s1321_s1 = inlined_call_operand.hbm [shape: bf16[64,32], index: 1, kind: input, shape index: {}]   ;;  %s1322_s2 = inlined_call_operand.hbm [shape: bf16[32,192], index: 2, kind: input, shape index: {}]   ;;  %s1323_s3 = inlined_call_operand.hbm [shape: f32[1,48], index: 3, kind: input, shape index: {}]   ;;  %s1324_s4 = inlined_call_operand.hbm [shape: bf16[48,128], index: 4, kind: input, shape index: {}]   ;;  %s1325_s5 = inlined_call_operand.hbm [shape: f32[1,128], index: 5, kind: input, shape index: {}]   ;;  %s1326_s6 = inlined_call_operand.hbm [shape: f32[2,128], index: 6, kind: output, shape index: {}]  }
   0x1   :  { %12 = vsyncpa [#allocation6], 0 }
   0x2   :  { %13 = vsyncpa [#allocation9], 0 }
   0x3   :  { %14 = vsyncpa [#allocation12], 0 }
   0x4   :  { %15 = vsyncpa [#allocation4], 0  ;;  %s1049_s21 = smov [#allocation5]   ;;  %s885_s25 = scalar_lea.hbm %s1321_s1, 512 }
   0x5   :  { %s31_s22 = sshll.u32 %s1049_s21, 4  ;;  %p886_p0 = scmp.ne.s32.totalorder %s1321_s1, %s885_s25  ;;  %s32_s22 = int_to_ptr.vmem [resolvable:$true] %s31_s22 }
   0x6   :  { %p889_p1 = scmp.lt.u32.totalorder %s885_s25, %s1321_s1 }
   0x8   :  { %p891_p2 = pnand %p889_p1, %p886_p0 }
   0xa   :  { %894 = shalt.err (!%p891_p2)
}
   0xb   :  { %s895_s30 = scalar_lea.vmem %s32_s22, 512  ;;  %p900_p4 = scmp.lt.s32.totalorder %s32_s22, %s32_s22 }
   0xc   :  { %p896_p3 = scmp.ne.s32.totalorder %s32_s22, %s895_s30  ;;  %p901_p5 = scmp.lt.s32.totalorder %s895_s30, %s895_s30 }
   0xe   :  { %p902_p6 = por %p901_p5, %p900_p4 }
  0x10   :  { %p903_p7 = pnand %p902_p6, %p896_p3 }
  0x12   :  { %906 = shalt.err (!%p903_p7)
}
  0x13   :  { %s1050_s7 = smov 64   ;;  %s1051_s8 = smov 4  }
  0x14   :  { %37 = dma.hbm_to_vmem [thread:$0]  %s1321_s1, 512, %s32_s22, [#allocation6], %s1050_s7, %s1050_s7, %s1051_s8  }
  0x15   :  { %s1052_s11 = smov [#allocation8]   ;;  %s1053_s13 = smov [#allocation2]  }
  0x16   :  { %s56_s12 = sshll.u32 %s1052_s11, 4  ;;  %s22_s14 = sshll.u32 %s1053_s13, 4  ;;  %s57_s12 = int_to_ptr.vmem [resolvable:$true] %s56_s12  ;;  %s23_s14 = int_to_ptr.vmem [resolvable:$true] %s22_s14 }
  0x17   :  { %s907_s17 = scalar_lea.hbm %s1323_s3, 16 }
  0x18   :  { %p908_p8 = scmp.ne.s32.totalorder %s1323_s3, %s907_s17  ;;  %p911_p9 = scmp.lt.u32.totalorder %s907_s17, %s1323_s3 }
  0x1a   :  { %p913_p10 = pnand %p911_p9, %p908_p8 }
  0x1c   :  { %916 = shalt.err (!%p913_p10)
}
  0x1d   :  { %s917_s1 = scalar_lea.vmem %s57_s12, 16  ;;  %s921_s22 = scalar_lea.vmem %s57_s12, 32 }
  0x1e   :  { %p918_p11 = scmp.ne.s32.totalorder %s57_s12, %s917_s1  ;;  %p922_p12 = scmp.lt.s32.totalorder %s57_s12, %s57_s12 }
  0x1f   :  { %p923_p13 = scmp.lt.s32.totalorder %s921_s22, %s917_s1 }
  0x21   :  { %p924_p0 = por %p923_p13, %p922_p12 }
  0x23   :  { %p925_p1 = pnand %p924_p0, %p918_p11 }
  0x25   :  { %928 = shalt.err (!%p925_p1)
}
  0x26   :  { %59 = dma.hbm_to_vmem [thread:$0]  %s1323_s3, 16, %s57_s12, [#allocation9]  }
  0x27   :  { %s929_s27 = scalar_lea.hbm %s1320_s0, 32 }
  0x28   :  { %p930_p2 = scmp.ne.s32.totalorder %s1320_s0, %s929_s27  ;;  %p933_p3 = scmp.lt.u32.totalorder %s929_s27, %s1320_s0 }
  0x2a   :  { %p935_p4 = pnand %p933_p3, %p930_p2 }
  0x2c   :  { %938 = shalt.err (!%p935_p4)
}
  0x2d   :  { %s939_s10 = scalar_lea.vmem %s23_s14, 32  ;;  %p944_p6 = scmp.lt.s32.totalorder %s23_s14, %s23_s14 }
  0x2e   :  { %p940_p5 = scmp.ne.s32.totalorder %s23_s14, %s939_s10  ;;  %p945_p7 = scmp.lt.s32.totalorder %s939_s10, %s939_s10 }
  0x30   :  { %p946_p8 = por %p945_p7, %p944_p6 }
  0x32   :  { %p947_p9 = pnand %p946_p8, %p940_p5 }
  0x34   :  { %950 = shalt.err (!%p947_p9)
}
  0x35   :  { %25 = dma.hbm_to_vmem [thread:$0]  %s1320_s0, 32, %s23_s14, [#allocation3]  }
  0x36   :  { %s1054_s12 = smov [#allocation7]   ;;  %s951_s17 = scalar_lea.hbm %s1322_s2, 512 }
  0x37   :  { %s43_s13 = sshll.u32 %s1054_s12, 4  ;;  %p952_p10 = scmp.ne.s32.totalorder %s1322_s2, %s951_s17  ;;  %s44_s13 = int_to_ptr.vmem [resolvable:$true] %s43_s13 }
  0x38   :  { %p955_p11 = scmp.lt.u32.totalorder %s951_s17, %s1322_s2 }
  0x3a   :  { %p957_p12 = pnand %p955_p11, %p952_p10 }
  0x3c   :  { %960 = shalt.err (!%p957_p12)
}
  0x3d   :  { %s961_s1 = scalar_lea.vmem %s44_s13, 512  ;;  %p966_p0 = scmp.lt.s32.totalorder %s44_s13, %s44_s13 }
  0x3e   :  { %p962_p13 = scmp.ne.s32.totalorder %s44_s13, %s961_s1  ;;  %p967_p1 = scmp.lt.s32.totalorder %s961_s1, %s961_s1 }
  0x40   :  { %p968_p2 = por %p967_p1, %p966_p0 }
  0x42   :  { %p969_p3 = pnand %p968_p2, %p962_p13 }
  0x44   :  { %972 = shalt.err (!%p969_p3)
}
  0x45   :  { %s1055_s0 = smov 128   ;;  %s1056_s14 = smov 8  }
  0x46   :  { %49 = dma.hbm_to_vmem [thread:$0]  %s1322_s2, 512, %s44_s13, [#allocation6], %s1055_s0, %s1055_s0, %s1056_s14  }
  0x47   :  { %s1057_s24 = smov [#allocation10]   ;;  %s1058_s26 = smov [#allocation11]  }
  0x48   :  { %s65_s25 = sshll.u32 %s1057_s24, 4  ;;  %s78_s27 = sshll.u32 %s1058_s26, 4  ;;  %s66_s25 = int_to_ptr.vmem [resolvable:$true] %s65_s25  ;;  %s79_s27 = int_to_ptr.vmem [resolvable:$true] %s78_s27 }
  0x49   :  { %s973_s30 = scalar_lea.hbm %s1324_s4, 384 }
  0x4a   :  { %p974_p4 = scmp.ne.s32.totalorder %s1324_s4, %s973_s30  ;;  %p977_p5 = scmp.lt.u32.totalorder %s973_s30, %s1324_s4 }
  0x4c   :  { %p979_p6 = pnand %p977_p5, %p974_p4 }
  0x4e   :  { %982 = shalt.err (!%p979_p6)
}
  0x4f   :  { %s983_s2 = scalar_lea.vmem %s66_s25, 384  ;;  %p988_p8 = scmp.lt.s32.totalorder %s66_s25, %s66_s25 }
  0x50   :  { %p984_p7 = scmp.ne.s32.totalorder %s66_s25, %s983_s2  ;;  %p989_p9 = scmp.lt.s32.totalorder %s983_s2, %s983_s2 }
  0x52   :  { %p990_p10 = por %p989_p9, %p988_p8 }
  0x54   :  { %p991_p11 = pnand %p990_p10, %p984_p7 }
  0x56   :  { %994 = shalt.err (!%p991_p11)
}
  0x57   :  { %71 = dma.hbm_to_vmem [thread:$0]  %s1324_s4, 384, %s66_s25, [#allocation9], %s1050_s7, %s1050_s7, %s1051_s8  }
  0x58   :  { %s995_s17 = scalar_lea.hbm %s1325_s5, 16 }
  0x59   :  { %p996_p12 = scmp.ne.s32.totalorder %s1325_s5, %s995_s17  ;;  %p999_p13 = scmp.lt.u32.totalorder %s995_s17, %s1325_s5 }
  0x5b   :  { %p1001_p0 = pnand %p999_p13, %p996_p12 }
  0x5d   :  { %1004 = shalt.err (!%p1001_p0)
}
  0x5e   :  { %s1005_s1 = scalar_lea.vmem %s79_s27, 16  ;;  %s1009_s0 = scalar_lea.vmem %s79_s27, 32 }
  0x5f   :  { %p1006_p1 = scmp.ne.s32.totalorder %s79_s27, %s1005_s1  ;;  %p1010_p2 = scmp.lt.s32.totalorder %s79_s27, %s79_s27 }
  0x60   :  { %p1011_p3 = scmp.lt.s32.totalorder %s1009_s0, %s1005_s1 }
  0x62   :  { %p1012_p4 = por %p1011_p3, %p1010_p2 }
  0x64   :  { %p1013_p5 = pnand %p1012_p4, %p1006_p1 }
  0x66   :  { %1016 = shalt.err (!%p1013_p5)
}
  0x67   :  { %81 = dma.hbm_to_vmem [thread:$0]  %s1325_s5, 16, %s79_s27, [#allocation12]  }
  0x68   :  { %1039 = dma.done.wait [#allocation3], 32  }
  0x69   :  { %1040 = vsyncadd [#allocation3], 4294967264 }
  0x6a   :  { %1041 = dma.done.wait [#allocation6], 1024  }
  0x6b   :  { %1042 = vsyncadd [#allocation6], 4294966272 }
  0x6c   :  { %1043 = dma.done.wait [#allocation9], 400  }
  0x6d   :  { %1044 = vsyncadd [#allocation9], 4294966896 }
  0x6e   :  { %1045 = dma.done.wait [#allocation12], 16  }
  0x6f   :  { %1046 = vsyncadd [#allocation12], 4294967280  ;;  %v102_v0 = vlaneseq  ;;  %v101_v4 = vld [vmem:[#allocation2] sm:$0x3]  ;;  %v872_v7 = vld [vmem:[#allocation5] sm:$0xff]   ;;  %v1059_v13 = vmov 0.0  }
  0x70   :  { %v873_v8 = vld [vmem:[#allocation5 + $0x8] sm:$0xff]   ;;  %823 = vmatprep.subr.bf16.mxu0 %v872_v7  ;;  %v874_v9 = vld [vmem:[#allocation5 + $0x10] sm:$0xff]   ;;  %v875_v12 = vld [vmem:[#allocation5 + $0x18] sm:$0xff]   ;;  %vm172_vm4 = vcmask 523264   ;;  %v1060_v27 = vmov 0   ;;  %vm254_vm5 = vcmask 261120  }
  0x71   :  { %v105_v1 = vshrl.u32 %v102_v0, 7  ;;  %824 = vmatpush3.bf16.msra.mxu0 %v872_v7  ;;  %v876_v10 = vld [vmem:[#allocation7 + $0x4] ss:$8 sps:$4 sm:$0xff]   ;;  %v878_v11 = vld [vmem:[#allocation7] ss:$8 sps:$4 sm:$0xff]   ;;  %v103_v14 = vand.u32 127, %v102_v0  ;;  %293 = vmatprep.mubr.bf16.mxu1 %v1060_v27 }
  0x72   :  { %825 = vmatprep.subr.bf16.mxu0 %v873_v8  ;;  %261 = vmatprep.subr.bf16.mxu1 %v876_v10  ;;  %v879_v25 = vld [vmem:[#allocation7 + $0x14] ss:$8 sps:$4 sm:$0xff]   ;;  %v881_v26 = vld [vmem:[#allocation7 + $0x10] ss:$8 sps:$4 sm:$0xff]   ;;  %v1187_v34 = vld [vmem:[#allocation8] ss:$0 sm:$0xff] }
  0x73   :  { %v117_v2 = vsub.s32 1, %v105_v1  ;;  %v106_v3 = vsub.s32 0, %v105_v1  ;;  %262 = vmatpush1.bf16.msra.mxu1 %v878_v11  ;;  %s1061_s5 = smov 32   ;;  %vm326_vm6 = vcmask 1046528   ;;  %vm349_vm7 = vcmask 1045504   ;;  %s1062_s14 = smov 112  }
  0x74   :  { %263 = vmatprep.subr.bf16.mxu1 %v879_v25  ;;  %vm408_vm8 = vcmask 1044480   ;;  %vm647_vm9 = vcmask 1043456   ;;  %s1063_s22 = smov 96   ;;  %s1064_s23 = smov 80   ;;  %vm1065_vm10 = vmmov 0   ;;  %vm388_vm11 = vcmask 128000  }
  0x75   :  { %v118_v5 = vrot.slane %v101_v4, %v117_v2  ;;  %v107_v6 = vrot.slane %v101_v4, %v106_v3  ;;  %826 = vmatpush3.bf16.msra.mxu0 %v873_v8  ;;  %vm386_vm12 = vcmask 130048   ;;  %vm444_vm13 = vcmask 520576   ;;  %s1067_s24 = smov [#allocation13]  }
  0x76   :  { %827 = vmatprep.subr.bf16.mxu0 %v874_v9  ;;  %vm442_vm14 = vcmask 523648   ;;  %vm468_vm15 = vcmask 1041409   ;;  %s775_s25 = sshll.u32 %s1067_s24, 4  ;;  %s776_s25 = int_to_ptr.vmem [resolvable:$true] %s775_s25 }
  0x77   :  { %120 = vbcast.lane.b32.xlu1 %v118_v5, 256  ;;  %109 = vbcast.lane.b32.xlu0 %v107_v6, 256  ;;  %s1017_s26 = scalar_lea.vmem %s776_s25, 32  ;;  %p1022_p7 = scmp.lt.s32.totalorder %s776_s25, %s776_s25 }
  0x78   :  { %264 = vmatpush1.bf16.msra.mxu1 %v881_v26  ;;  %p1018_p6 = scmp.ne.s32.totalorder %s776_s25, %s1017_s26  ;;  %p1023_p8 = scmp.lt.s32.totalorder %s1017_s26, %s1017_s26 }
  0x79   :  { %828 = vmatpush3.bf16.msra.mxu0 %v874_v9  ;;  %841 = vmatprep.subr.bf16.mxu1 %v1059_v13 }
  0x7a   :  { %829 = vmatprep.subr.bf16.mxu0 %v875_v12  ;;  %p1024_p9 = por %p1023_p8, %p1022_p7 }
  0x7b   :  { %124 = vbcast.lane.b32.xlu1 %v118_v5, 264  ;;  %113 = vbcast.lane.b32.xlu0 %v107_v6, 264 }
  0x7c   :  { %p1025_p10 = pnand %p1024_p9, %p1018_p6 }
  0x7d   :  { %830 = vmatpush3.bf16.msra.mxu0 %v875_v12 }
  0x7e   :  { %835 = vmatprep.subr.bf16.mxu0 %v1059_v13 }
  0x7f   :  { %431 = vrot.lane.b32.xlu0 %v1187_v34, %s1061_s5 }
  0xe9   :  { %v121_v15 = vpop.permute.xlu1 %120  ;;  %v110_v16 = vpop.permute.xlu0 %109 }
  0xea   :  { %vm128_vm0 = vcmp.eq.s32.totalorder %v121_v15, %v103_v14  ;;  %vm126_vm1 = vcmp.eq.s32.totalorder %v110_v16, %v103_v14 }
  0xeb   :  { %v789_v19 = vsel %vm128_vm0, 1.0, %v1059_v13  ;;  %v787_v20 = vsel %vm126_vm1, 1.0, %v1059_v13  ;;  %vm681_vm0 = vcmask 1048448   ;;  %vm683_vm1 = vcmask 1044352  }
  0xed   :  { %v125_v17 = vpop.permute.xlu1 %124  ;;  %v114_v18 = vpop.permute.xlu0 %113 }
  0xee   :  { %vm129_vm2 = vcmp.eq.s32.totalorder %v125_v17, %v103_v14  ;;  %vm127_vm3 = vcmp.eq.s32.totalorder %v114_v18, %v103_v14 }
  0xef   :  { %v790_v21 = vsel %vm129_vm2, 1.0, %v1059_v13  ;;  %v788_v22 = vsel %vm127_vm3, 1.0, %v1059_v13 }
  0xf0   :  { %v139_v23 = vpack.c.bf16 %v790_v21, %v789_v19  ;;  %v138_v24 = vpack.c.bf16 %v788_v22, %v787_v20  ;;  %v882_v22 = vld [vmem:[#allocation10] sm:$0xff]  }
  0xf2   :  { %831 = vmatprep.mubr.msk.bf16.mxu0 %vm172_vm4, %v138_v24  ;;  %v1259_v24 = vpop.permute.xlu0 %431 }
  0xf3   :  { %832 = vmatmul.mubr.msk.bf16.vlgmr.msra.gmra.mrb[0].mxu0 %vm172_vm4, %v139_v23  ;;  %v883_v23 = vld [vmem:[#allocation10 + $0x8] sm:$0xff]  }
  0xf4   :  { %837 = vmatprep.mubr.msk.bf16.mxu0 %vm1065_vm10, %v1059_v13  ;;  %836 = vmatpush3.bf16.msra.mxu0 %v883_v23 }
  0xf5   :  { %847 = vmatprep.subr.bf16.mxu0 %v1059_v13 }
 0x1c6   :  { %v833_v28 = vpop.f32.mrb[0].mxu0 }
 0x1c7   :  { %v213_v29 = vpop.f32.mrb[1].mxu0 }
 0x1c8   :  { %v834_v30 = vpop.f32.mrb[2].mxu0 }
 0x1c9   :  { %v229_v31 = vpack.c.bf16 %v834_v30, %v833_v28  ;;  %v216_v32 = vpop.f32.mrb[3].mxu0 }
 0x1ca   :  { %v228_v33 = vpack.c.bf16 %v216_v32, %v213_v29 }
 0x1cc   :  { %801 = vmatmul.mubr.msk.bf16.vlgmr.msra.gmra.mrb[0].mxu1 %vm254_vm5, %v228_v33 }
 0x1cd   :  { %303 = vmatprep.mubr.bf16.mxu1 %v1060_v27  ;;  %842 = vmatpush3.bf16.msra.mxu1 %v882_v22 }
 0x1d4   :  { %802 = vmatmul.mubr.msk.bf16.gmra.mrb[4].mxu1 %vm254_vm5, %v229_v31 }
 0x1d5   :  { %843 = vmatprep.mubr.msk.bf16.mxu1 %vm1065_vm10, %v1059_v13 }
 0x29f   :  { %v1190_v35 = vpop.f32.mrb[0].mxu1 }
 0x2a0   :  { %v297_v36 = vpop.f32.mrb[1].mxu1  ;;  %v327_v37 = vrot.slane %v1190_v35, 1  ;;  %v350_v38 = vrot.slane %v1190_v35, 2  ;;  %v409_v43 = vrot.slane %v1190_v35, 3 }
 0x2a1   :  { %v581_v39 = vrot.slane %v297_v36, 1  ;;  %v603_v40 = vrot.slane %v297_v36, 2  ;;  %v625_v41 = vrot.slane %v297_v36, 3  ;;  %v1194_v42 = vpop.f32.mrb[2].mxu1  ;;  %v648_v48 = vrot.slane %v297_v36, 4 }
 0x2a2   :  { %v301_v44 = vpop.f32.mrb[3].mxu1  ;;  %v328_v45 = vrot.slane %v1194_v42, 1  ;;  %v351_v46 = vrot.slane %v1194_v42, 2  ;;  %v410_v47 = vrot.slane %v1194_v42, 3 }
 0x2a3   :  { %v582_v49 = vrot.slane %v301_v44, 1  ;;  %v604_v50 = vrot.slane %v301_v44, 2  ;;  %v626_v51 = vrot.slane %v301_v44, 3  ;;  %v649_v52 = vrot.slane %v301_v44, 4 }
 0x2a4   :  { %335 = vrot.lane.b32.xlu1 %v328_v45, %s1062_s14  ;;  %v329_v53 = vsel %vm326_vm6, %v327_v37, %v328_v45  ;;  %v352_v54 = vsel %vm349_vm7, %v350_v38, %v351_v46  ;;  %v411_v55 = vsel %vm408_vm8, %v409_v43, %v410_v47 }
 0x2a5   :  { %333 = vrot.lane.b32.xlu0 %v329_v53, %s1062_s14  ;;  %v583_v56 = vsel %vm326_vm6, %v581_v39, %v582_v49  ;;  %v605_v57 = vsel %vm349_vm7, %v603_v40, %v604_v50  ;;  %v627_v58 = vsel %vm408_vm8, %v625_v41, %v626_v51  ;;  %v650_v59 = vsel %vm647_vm9, %v648_v48, %v649_v52 }
 0x2a7   :  { %v1209_v60 = vpop.f32.mrb[4].mxu1 }
 0x2a8   :  { %358 = vrot.lane.b32.xlu1 %v351_v46, %s1063_s22  ;;  %v307_v61 = vpop.f32.mrb[5].mxu1  ;;  %v330_v62 = vrot.slane %v1209_v60, 1  ;;  %v353_v63 = vrot.slane %v1209_v60, 2  ;;  %v412_v4 = vrot.slane %v1209_v60, 3 }
 0x2a9   :  { %v584_v0 = vrot.slane %v307_v61, 1  ;;  %v606_v1 = vrot.slane %v307_v61, 2  ;;  %v628_v2 = vrot.slane %v307_v61, 3  ;;  %356 = vrot.lane.b32.xlu0 %v352_v54, %s1063_s22  ;;  %v1215_v3 = vpop.f32.mrb[6].mxu1  ;;  %v651_v9 = vrot.slane %v307_v61, 4 }
 0x2aa   :  { %v311_v5 = vpop.f32.mrb[7].mxu1  ;;  %v331_v6 = vrot.slane %v1215_v3, 1  ;;  %v354_v7 = vrot.slane %v1215_v3, 2  ;;  %v413_v8 = vrot.slane %v1215_v3, 3 }
 0x2ab   :  { %v585_v10 = vrot.slane %v311_v5, 1  ;;  %v607_v11 = vrot.slane %v311_v5, 2  ;;  %v629_v12 = vrot.slane %v311_v5, 3  ;;  %v652_v14 = vrot.slane %v311_v5, 4 }
 0x2ac   :  { %417 = vrot.lane.b32.xlu1 %v410_v47, %s1064_s23  ;;  %v332_v15 = vsel %vm326_vm6, %v330_v62, %v331_v6  ;;  %v355_v16 = vsel %vm349_vm7, %v353_v63, %v354_v7  ;;  %v414_v17 = vsel %vm408_vm8, %v412_v4, %v413_v8 }
 0x2ad   :  { %415 = vrot.lane.b32.xlu0 %v411_v55, %s1064_s23  ;;  %v586_v18 = vsel %vm326_vm6, %v584_v0, %v585_v10  ;;  %v608_v19 = vsel %vm349_vm7, %v606_v1, %v607_v11  ;;  %v630_v20 = vsel %vm408_vm8, %v628_v2, %v629_v12  ;;  %v653_v21 = vsel %vm647_vm9, %v651_v9, %v652_v14 }
 0x2b0   :  { %587 = vrot.lane.b32.xlu1 %v583_v56, %s1062_s14 }
 0x2b1   :  { %589 = vrot.lane.b32.xlu0 %v582_v49, %s1062_s14 }
 0x2b4   :  { %609 = vrot.lane.b32.xlu1 %v605_v57, %s1063_s22 }
 0x2b5   :  { %611 = vrot.lane.b32.xlu0 %v604_v50, %s1063_s22 }
 0x2b8   :  { %631 = vrot.lane.b32.xlu1 %v627_v58, %s1064_s23 }
 0x2b9   :  { %633 = vrot.lane.b32.xlu0 %v626_v51, %s1064_s23 }
 0x2bc   :  { %654 = vrot.lane.b32.xlu1 %v650_v59, %s1050_s7 }
 0x2bd   :  { %656 = vrot.lane.b32.xlu0 %v649_v52, %s1050_s7 }
 0x2c0   :  { %339 = vrot.lane.b32.xlu1 %v331_v6, %s1062_s14 }
 0x2c1   :  { %337 = vrot.lane.b32.xlu0 %v332_v15, %s1062_s14 }
 0x2c4   :  { %362 = vrot.lane.b32.xlu1 %v354_v7, %s1063_s22 }
 0x2c5   :  { %360 = vrot.lane.b32.xlu0 %v355_v16, %s1063_s22 }
 0x2c8   :  { %421 = vrot.lane.b32.xlu1 %v413_v8, %s1064_s23 }
 0x2c9   :  { %419 = vrot.lane.b32.xlu0 %v414_v17, %s1064_s23 }
 0x2cc   :  { %591 = vrot.lane.b32.xlu1 %v586_v18, %s1062_s14 }
 0x2cd   :  { %593 = vrot.lane.b32.xlu0 %v585_v10, %s1062_s14 }
 0x2d0   :  { %613 = vrot.lane.b32.xlu1 %v608_v19, %s1063_s22 }
 0x2d1   :  { %615 = vrot.lane.b32.xlu0 %v607_v11, %s1063_s22 }
 0x2d4   :  { %635 = vrot.lane.b32.xlu1 %v630_v20, %s1064_s23 }
 0x2d5   :  { %637 = vrot.lane.b32.xlu0 %v629_v12, %s1064_s23 }
 0x2d8   :  { %658 = vrot.lane.b32.xlu1 %v653_v21, %s1050_s7 }
 0x2d9   :  { %660 = vrot.lane.b32.xlu0 %v652_v14, %s1050_s7  ;;  %s1066_s7 = smov 16  }
 0x2dc   :  { %670 = vrot.lane.b32.xlu1 %v1187_v34, %s1064_s23 }
 0x316   :  { %v336_v25 = vpop.permute.xlu1 %335 }
 0x317   :  { %v334_v26 = vpop.permute.xlu0 %333  ;;  %v346_v27 = vadd.f32 %v336_v25, %v1194_v42 }
 0x318   :  { %v345_v28 = vadd.f32 %v334_v26, %v1190_v35 }
 0x31a   :  { %v359_v29 = vpop.permute.xlu1 %358 }
 0x31b   :  { %v369_v30 = vadd.f32 %v359_v29, %v346_v27  ;;  %v357_v31 = vpop.permute.xlu0 %356 }
 0x31c   :  { %v368_v32 = vadd.f32 %v357_v31, %v345_v28 }
 0x31d   :  { %v379_v33 = vadd.f32 %v1187_v34, %v369_v30 }
 0x31e   :  { %v378_v36 = vadd.f32 %v1187_v34, %v368_v32  ;;  %v418_v37 = vpop.permute.xlu1 %417 }
 0x31f   :  { %v383_v38 = vmax.f32 %v379_v33, 0.0  ;;  %v428_v39 = vadd.f32 %v418_v37, %v369_v30  ;;  %v416_v40 = vpop.permute.xlu0 %415 }
 0x320   :  { %v382_v41 = vmax.f32 %v378_v36, 0.0  ;;  %v427_v43 = vadd.f32 %v416_v40, %v368_v32 }
 0x321   :  { %v389_v44 = vsel %vm388_vm11, %v383_v38, -inf  ;;  %v435_v45 = vadd.f32 %v1259_v24, %v428_v39 }
 0x322   :  { %v387_v46 = vsel %vm386_vm12, %v382_v41, -inf  ;;  %v434_v47 = vadd.f32 %v1259_v24, %v427_v43  ;;  %v588_v48 = vpop.permute.xlu1 %587 }
 0x323   :  { %v390_v49 = vmax.f32 %v387_v46, %v389_v44  ;;  %v439_v50 = vmax.f32 %v435_v45, 0.0  ;;  %v590_v51 = vpop.permute.xlu0 %589 }
 0x324   :  { %v438_v52 = vmax.f32 %v434_v47, 0.0  ;;  %v599_v47 = vadd.f32 %v588_v48, %v1190_v35 }
 0x325   :  { %v445_v53 = vsel %vm444_vm13, %v439_v50, -inf  ;;  %v391_v63 = vrot.slane %v390_v49, 4 }
 0x326   :  { %v443_v54 = vsel %vm442_vm14, %v438_v52, -inf  ;;  %v610_v55 = vpop.permute.xlu1 %609  ;;  %v600_v52 = vadd.f32 %v590_v51, %v1194_v42 }
 0x327   :  { %v446_v56 = vmax.f32 %v443_v54, %v445_v53  ;;  %v612_v57 = vpop.permute.xlu0 %611  ;;  %v392_v4 = vmax.f32 %v390_v49, %v391_v63 }
 0x329   :  { %v447_v9 = vrot.slane %v446_v56, 4  ;;  %v393_v12 = vrot.slane %v392_v4, 2 }
 0x32a   :  { %v1271_v58 = vpop.permute.xlu1 %631 }
 0x32b   :  { %v1273_v59 = vpop.permute.xlu0 %633  ;;  %v448_v19 = vmax.f32 %v446_v56, %v447_v9  ;;  %v394_v25 = vmax.f32 %v392_v4, %v393_v12  ;;  %v622_v4 = vadd.f32 %v612_v57, %v600_v52 }
 0x32d   :  { %v449_v31 = vrot.slane %v448_v19, 2  ;;  %v395_v37 = vrot.slane %v394_v25, 1  ;;  %v644_v9 = vadd.f32 %v1273_v59, %v622_v4 }
 0x32e   :  { %v1275_v61 = vpop.permute.xlu1 %654 }
 0x32f   :  { %v1277_v62 = vpop.permute.xlu0 %656  ;;  %v450_v44 = vmax.f32 %v448_v19, %v449_v31 }
 0x330   :  { %v667_v57 = vadd.f32 %v1277_v62, %v644_v9 }
 0x332   :  { %v340_v0 = vpop.permute.xlu1 %339 }
 0x333   :  { %v338_v1 = vpop.permute.xlu0 %337  ;;  %v348_v2 = vadd.f32 %v340_v0, %v1215_v3  ;;  %v621_v0 = vadd.f32 %v610_v55, %v599_v47 }
 0x334   :  { %v347_v5 = vadd.f32 %v338_v1, %v1209_v60 }
 0x335   :  { %v643_v35 = vadd.f32 %v1271_v58, %v621_v0 }
 0x336   :  { %v363_v6 = vpop.permute.xlu1 %362 }
 0x337   :  { %v371_v7 = vadd.f32 %v363_v6, %v348_v2  ;;  %v361_v8 = vpop.permute.xlu0 %360  ;;  %v451_v2 = vrot.slane %v450_v44, 1 }
 0x338   :  { %v370_v10 = vadd.f32 %v361_v8, %v347_v5 }
 0x339   :  { %v381_v11 = vadd.f32 %v1187_v34, %v371_v7  ;;  %v452_v12 = vmax.f32 %v450_v44, %v451_v2 }
 0x33a   :  { %v380_v14 = vadd.f32 %v1187_v34, %v370_v10  ;;  %v422_v15 = vpop.permute.xlu1 %421 }
 0x33b   :  { %v385_v16 = vmax.f32 %v381_v11, 0.0  ;;  %v430_v17 = vadd.f32 %v422_v15, %v371_v7  ;;  %v420_v18 = vpop.permute.xlu0 %419 }
 0x33c   :  { %v384_v20 = vmax.f32 %v380_v14, 0.0  ;;  %v429_v21 = vadd.f32 %v420_v18, %v370_v10 }
 0x33d   :  { %v398_v22 = vsel %vm388_vm11, %v385_v16, -inf  ;;  %v437_v23 = vadd.f32 %v1259_v24, %v430_v17 }
 0x33e   :  { %v397_v26 = vsel %vm386_vm12, %v384_v20, -inf  ;;  %v436_v27 = vadd.f32 %v1259_v24, %v429_v21  ;;  %v592_v28 = vpop.permute.xlu1 %591  ;;  %v396_v24 = vmax.f32 %v394_v25, %v395_v37 }
 0x33f   :  { %v399_v29 = vmax.f32 %v397_v26, %v398_v22  ;;  %v441_v30 = vmax.f32 %v437_v23, 0.0  ;;  %v594_v34 = vpop.permute.xlu0 %593  ;;  %v601_v56 = vadd.f32 %v592_v28, %v1209_v60  ;;  %v666_v60 = vadd.f32 %v1275_v61, %v643_v35 }
 0x340   :  { %v440_v32 = vmax.f32 %v436_v27, 0.0  ;;  %v602_v49 = vadd.f32 %v594_v34, %v1215_v3  ;;  %v406_v8 = vpack.c.bf16 %v396_v24, %v396_v24  ;;  %v462_v23 = vpack.c.bf16 %v452_v12, %v452_v12 }
 0x341   :  { %v400_v33 = vrot.slane %v399_v29, 4  ;;  %v454_v36 = vsel %vm444_vm13, %v441_v30, -inf }
 0x342   :  { %v453_v38 = vsel %vm442_vm14, %v440_v32, -inf  ;;  %v614_v39 = vpop.permute.xlu1 %613  ;;  %v524_v17 = vunpack.c.l.b16 %v406_v8 }
 0x343   :  { %v401_v40 = vmax.f32 %v399_v29, %v400_v33  ;;  %v455_v41 = vmax.f32 %v453_v38, %v454_v36  ;;  %v616_v43 = vpop.permute.xlu0 %615  ;;  %v623_v7 = vadd.f32 %v614_v39, %v601_v56  ;;  %v466_v36 = vunpack.c.l.b16 %v462_v23 }
 0x344   :  { %v624_v1 = vadd.f32 %v616_v43, %v602_v49 }
 0x345   :  { %v402_v45 = vrot.slane %v401_v40, 2  ;;  %v456_v46 = vrot.slane %v455_v41, 4 }
 0x346   :  { %v636_v50 = vpop.permute.xlu1 %635 }
 0x347   :  { %v403_v53 = vmax.f32 %v401_v40, %v402_v45  ;;  %v457_v54 = vmax.f32 %v455_v41, %v456_v46  ;;  %v638_v63 = vpop.permute.xlu0 %637  ;;  %v645_v10 = vadd.f32 %v636_v50, %v623_v7 }
 0x348   :  { %v646_v48 = vadd.f32 %v638_v63, %v624_v1 }
 0x349   :  { %v404_v5 = vrot.slane %v403_v53, 1  ;;  %v458_v6 = vrot.slane %v457_v54, 2 }
 0x34a   :  { %v659_v3 = vpop.permute.xlu1 %658 }
 0x34b   :  { %v405_v42 = vmax.f32 %v403_v53, %v404_v5  ;;  %v459_v51 = vmax.f32 %v457_v54, %v458_v6  ;;  %v661_v11 = vpop.permute.xlu0 %660  ;;  %v668_v15 = vadd.f32 %v659_v3, %v645_v10  ;;  %v884_v5 = vld [vmem:[#allocation10 + $0x10] sm:$0xff]  }
 0x34c   :  { %v669_v55 = vadd.f32 %v661_v11, %v646_v48 }
 0x34d   :  { %v407_v14 = vpack.c.bf16 %v405_v42, %v405_v42  ;;  %v460_v16 = vrot.slane %v459_v51, 1 }
 0x34e   :  { %v671_v58 = vpop.permute.xlu1 %670 }
 0x34f   :  { %v525_v18 = vunpack.c.l.b16 %v407_v14  ;;  %v673_v19 = vadd.f32 %v671_v58, %v666_v60  ;;  %v674_v59 = vadd.f32 %v671_v58, %v667_v57  ;;  %v675_v20 = vadd.f32 %v671_v58, %v668_v15  ;;  %v810_v60 = vld [vmem:[#allocation11] ss:$0 sm:$0xff] }
 0x350   :  { %v676_v21 = vadd.f32 %v671_v58, %v669_v55  ;;  %v461_v22 = vmax.f32 %v459_v51, %v460_v16 }
 0x351   :  { %v526_v61 = vsel %vm468_vm15, %v525_v18, %v524_v17  ;;  %v677_v25 = vmax.f32 %v673_v19, 0.0  ;;  %v678_v26 = vmax.f32 %v674_v59, 0.0  ;;  %v679_v62 = vmax.f32 %v675_v20, 0.0 }
 0x352   :  { %v680_v27 = vmax.f32 %v676_v21, 0.0  ;;  %v527_v28 = vpack.c.b16 %v526_v61, %v526_v61  ;;  %v463_v29 = vpack.c.bf16 %v461_v22, %v461_v22 }
 0x353   :  { %v682_v30 = vsel %vm681_vm0, %v677_v25, -inf  ;;  %v684_v34 = vsel %vm683_vm1, %v678_v26, -inf  ;;  %v692_v31 = vsel %vm681_vm0, %v679_v62, -inf }
 0x354   :  { %v685_v32 = vmax.f32 %v682_v30, %v684_v34  ;;  %v693_v33 = vsel %vm683_vm1, %v680_v27, -inf  ;;  %844 = vmatmul.mubr.msk.bf16.vlgmr.msra.gmra.mrb[8].mxu1 %vm386_vm12, %v527_v28  ;;  %v467_v37 = vunpack.c.l.b16 %v463_v29 }
 0x355   :  { %v694_v38 = vmax.f32 %v692_v31, %v693_v33 }
 0x356   :  { %v686_v39 = vrot.slane %v685_v32, 4  ;;  %v469_v40 = vsel %vm468_vm15, %v467_v37, %v466_v36 }
 0x357   :  { %v695_v41 = vrot.slane %v694_v38, 4  ;;  %v470_v43 = vpack.c.b16 %v469_v40, %v469_v40 }
 0x358   :  { %v687_v44 = vmax.f32 %v685_v32, %v686_v39 }
 0x359   :  { %v696_v45 = vmax.f32 %v694_v38, %v695_v41  ;;  %471 = vrot.lane.b32.xlu0 %v470_v43, %s1064_s23 }
 0x35a   :  { %v688_v46 = vrot.slane %v687_v44, 2 }
 0x35b   :  { %v697_v24 = vrot.slane %v696_v45, 2 }
 0x35c   :  { %v689_v47 = vmax.f32 %v687_v44, %v688_v46 }
 0x35d   :  { %v698_v49 = vmax.f32 %v696_v45, %v697_v24 }
 0x35e   :  { %v690_v50 = vrot.slane %v689_v47, 1 }
 0x35f   :  { %v699_v52 = vrot.slane %v698_v49, 1 }
 0x360   :  { %v691_v53 = vmax.f32 %v689_v47, %v690_v50 }
 0x361   :  { %v700_v54 = vmax.f32 %v698_v49, %v699_v52 }
 0x362   :  { %v701_v56 = vpack.c.bf16 %v691_v53, %v691_v53 }
 0x363   :  { %v702_v63 = vpack.c.bf16 %v700_v54, %v700_v54 }
 0x364   :  { %v705_v0 = vunpack.c.l.b16 %v701_v56 }
 0x365   :  { %v706_v1 = vunpack.c.l.b16 %v702_v63 }
 0x367   :  { %v707_v2 = vsel %vm468_vm15, %v706_v1, %v705_v0 }
 0x368   :  { %v708_v4 = vpack.c.b16 %v707_v2, %v707_v2 }
 0x36a   :  { %709 = vrot.lane.b32.xlu1 %v708_v4, %s1066_s7 }
 0x3cb   :  { %v472_v6 = vpop.permute.xlu0 %471 }
 0x3cc   :  { %838 = vmatmul.mubr.msk.bf16.vlgmr.msra.gmra.mrb[4].mxu0 %vm386_vm12, %v472_v6 }
 0x3cd   :  { %848 = vmatpush3.bf16.msra.mxu0 %v884_v5  ;;  %849 = vmatprep.mubr.msk.bf16.mxu0 %vm1065_vm10, %v1059_v13 }
 0x3dc   :  { %v710_v7 = vpop.permute.xlu1 %709 }
 0x3dd   :  { %850 = vmatmul.mubr.msk.bf16.vlgmr.msra.gmra.mrb[8].mxu0 %vm386_vm12, %v710_v7 }
 0x427   :  { %v571_v8 = vpop.f32.mrb[8].mxu1 }
 0x428   :  { %v845_v35 = vpop.f32.mrb[9].mxu1 }
 0x429   :  { %v574_v48 = vpop.f32.mrb[10].mxu1 }
 0x42a   :  { %v846_v3 = vpop.f32.mrb[11].mxu1 }
 0x49f   :  { %v516_v9 = vpop.f32.mrb[4].mxu0 }
 0x4a0   :  { %v572_v42 = vadd.f32 %v571_v8, %v516_v9  ;;  %v839_v51 = vpop.f32.mrb[5].mxu0 }
 0x4a1   :  { %v519_v10 = vpop.f32.mrb[6].mxu0 }
 0x4a2   :  { %v840_v11 = vpop.f32.mrb[7].mxu0 }
 0x4b0   :  { %v754_v55 = vpop.f32.mrb[8].mxu0 }
 0x4b1   :  { %v760_v12 = vadd.f32 %v754_v55, %v572_v42  ;;  %v851_v57 = vpop.f32.mrb[9].mxu0 }
 0x4b2   :  { %v757_v14 = vpop.f32.mrb[10].mxu0 }
 0x4b3   :  { %v767_v13 = vadd.f32 %v810_v60, %v760_v12  ;;  %v852_v15 = vpop.f32.mrb[11].mxu0 }
 0x4b5   :  { %768 = vst [vmem:[#allocation13] sm:$0x3] %v767_v13 }
 0x4b6   :  { %1028 = shalt.err (!%p1025_p10)
}
 0x4b7   :  { %s1029_s29 = scalar_lea.hbm %s1326_s6, 32 }
 0x4b8   :  { %p1030_p11 = scmp.ne.s32.totalorder %s1326_s6, %s1029_s29  ;;  %p1033_p12 = scmp.lt.u32.totalorder %s1029_s29, %s1326_s6 }
 0x4ba   :  { %p1035_p13 = pnand %p1033_p12, %p1030_p11 }
 0x4bc   :  { %1038 = shalt.err (!%p1035_p13)
}
 0x4bd   :  { %778 = dma.vmem_to_hbm [thread:$0]  %s776_s25, 32, %s1326_s6, [#allocation4]  }
 0x4be   :  { %1047 = dma.done.wait [#allocation4], 32  }
 0x4bf   :  { %1048 = vsyncadd [#allocation4], 4294967264 }
 0x4c0   :  { %782 = vsyncpa [#allocation3], 1 }
 0x4c1   :  { %783 = vsyncpa [#allocation6], 1 }
 0x4c2   :  { %784 = vsyncpa [#allocation9], 1 }
 0x4c3   :  { %785 = vsyncpa [#allocation12], 1 }
 0x4c4   :  { %786 = vsyncpa [#allocation4], 1 }

</bundles_post_ra>
